<compile_context>
chip_gen: v6e
topology: v6e:2x2x1
jax: 0.10.0
libtpu: 0.0.40
codegen_flags: <defaults>
</compile_context>

<pallas_src>
import functools
import math

import jax
import jax.numpy as jnp
from jax.experimental import pallas as pl
from jax.experimental.pallas import tpu as pltpu


def _learnable_sigmoid_kernel(x_ref, slope_ref, o_ref, *, beta):
    # x_ref: (TM, Fk) streamed row tile; slope_ref: (1, Fk) f32 constant tile.
    x = x_ref[...].astype(jnp.float32)       # promote (matches f32 nn.Parameter)
    s = slope_ref[...]                       # f32
    y = beta * jax.nn.sigmoid(s * x)         # VPU mul + EUP exp/recip
    o_ref[...] = y.astype(o_ref.dtype)


def learnable_sigmoid_1d(x, slope, beta=1.0):
    """x: (..., F), slope: (F,). Returns beta * sigmoid(slope * x)."""
    orig_shape = x.shape
    F = int(slope.shape[0])
    assert orig_shape[-1] == F, "last dim of x must equal in_features"

    x2d = x.reshape(-1, F)                   # (M, F)
    M = x2d.shape[0]

    # ---- lane-dense fold: make the last dim a multiple of 128 ----
    k = math.lcm(F, 128) // F                # == 128 // gcd(F, 128)
    if k > 1 and (M % k != 0 or k * F > 4096):
        # TODO(synk): a tiny tail kernel could keep the fold when M % k != 0.
        k = 1
    Fk = k * F
    Mk = M // k                              # folded row count (exact, no padding)

    itemsize = jnp.dtype(x.dtype).itemsize
    pack = 8 * max(1, 4 // itemsize)         # sublane pack: 8 f32, 16 bf16, 32 int8

    # ---- row tile from a ~4 MiB/buffer budget (2x in + 2x out ~= 16 MiB) ----
    PER_BUF = 4 * 1024 * 1024
    tm_cap = max(pack, (PER_BUF // (Fk * itemsize)) // pack * pack)
    if tm_cap >= Mk:
        if Mk > 2 * pack:
            # keep >= 2 grid steps so both v7x TensorCores get work
            half = -(-Mk // 2)
            TM = -(-half // pack) * pack
            if TM >= Mk:
                TM = Mk                      # block == full dim is always legal
        else:
            TM = Mk
    else:
        TM = tm_cap
    grid_m = pl.cdiv(Mk, TM)                 # ragged last block is masked by Pallas

    xk = x2d.reshape(Mk, Fk)                 # row-major consistent, no data movement
    slope_f32 = slope.astype(jnp.float32)
    slope_blk = (jnp.tile(slope_f32, (k,)) if k > 1 else slope_f32).reshape(1, Fk)

    footprint = 4 * TM * Fk * itemsize + 2 * Fk * 4
    vmem_limit = int(min(56 << 20, max(32 << 20, footprint + (4 << 20))))

    out = pl.pallas_call(
        functools.partial(_learnable_sigmoid_kernel, beta=float(beta)),
        out_shape=jax.ShapeDtypeStruct((Mk, Fk), x.dtype),
        grid=(grid_m,),
        in_specs=[
            pl.BlockSpec((TM, Fk), lambda i: (i, 0)),   # streamed row tiles
            pl.BlockSpec((1, Fk), lambda i: (0, 0)),    # slope: constant block
        ],
        out_specs=pl.BlockSpec((TM, Fk), lambda i: (i, 0)),
        compiler_params=pltpu.CompilerParams(
            dimension_semantics=("parallel",),          # rows independent -> megacore
            vmem_limit_bytes=vmem_limit,
        ),
    )(xk, slope_blk)

    return out.reshape(orig_shape)


if __name__ == "__main__":
    key = jax.random.PRNGKey(0)

    B, T, F = 2, 8, 32          # in_features = 32
    beta = 1.0

    x = jax.random.normal(key, (B, T, F), dtype=jnp.float32)
    # Deterministic parameter init, matching nn.Parameter(torch.ones(in_features)).
    slope = jnp.ones((F,), dtype=jnp.float32)

    out = learnable_sigmoid_1d(x, slope, beta=beta)
    out = jax.block_until_ready(out)

    # Reference check in plain JAX.
    ref = beta * jax.nn.sigmoid(slope * x)
    assert out.shape == x.shape
    assert jnp.allclose(out, ref, atol=1e-6), "mismatch vs reference"

    print("KERNEL_OK")
</pallas_src>

<mosaic_0001>
module attributes {stable_mosaic.version = 11 : i64} {
  func.func @_learnable_sigmoid_kernel(%arg0: i32, %arg1: memref<4x128xf32, #tpu.memory_space<vmem>>, %arg2: memref<1x128xf32, #tpu.memory_space<vmem>>, %arg3: memref<4x128xf32, #tpu.memory_space<vmem>>) attributes {dimension_semantics = [#tpu.dimension_semantics<parallel>], iteration_bounds = array<i64: 1>, scalar_prefetch = 0 : i64, scratch_operands = 0 : i64, tpu.core_type = #tpu.core_type<tc>, window_params = [{transform_indices = @transform_0, window_bounds = array<i64: 4, 128>}, {pipeline_mode = #tpu.pipeline_mode<synchronous>, transform_indices = @transform_1, window_bounds = array<i64: 1, 128>}, {transform_indices = @transform_2, window_bounds = array<i64: 4, 128>}]} {
    %c0 = arith.constant 0 : index
    %c0_0 = arith.constant 0 : index
    %0 = vector.load %arg1[%c0, %c0_0] : memref<4x128xf32, #tpu.memory_space<vmem>>, vector<4x128xf32>
    %c0_1 = arith.constant 0 : index
    %c0_2 = arith.constant 0 : index
    %1 = vector.load %arg2[%c0_1, %c0_2] : memref<1x128xf32, #tpu.memory_space<vmem>>, vector<1x128xf32>
    %2 = vector.broadcast %1 : vector<1x128xf32> to vector<4x128xf32>
    %3 = arith.mulf %2, %0 : vector<4x128xf32>
    %4 = arith.negf %3 : vector<4x128xf32>
    %5 = math.exp %4 : vector<4x128xf32>
    %cst = arith.constant 1.000000e+00 : f32
    %6 = vector.broadcast %cst : f32 to vector<4x128xf32>
    %7 = arith.addf %6, %5 : vector<4x128xf32>
    %8 = arith.divf %6, %7 : vector<4x128xf32>
    %cst_3 = arith.constant 1.000000e+00 : f32
    %9 = vector.broadcast %cst_3 : f32 to vector<4x128xf32>
    %10 = arith.mulf %9, %8 : vector<4x128xf32>
    %c0_4 = arith.constant 0 : index
    %c0_5 = arith.constant 0 : index
    %11 = vector.load %arg3[%c0_4, %c0_5] : memref<4x128xf32, #tpu.memory_space<vmem>>, vector<4x128xf32>
    tpu.vector_store %arg3[%c0_4, %c0_5], %10 {strides = array<i32>} : memref<4x128xf32, #tpu.memory_space<vmem>>, vector<4x128xf32>,
    return
  }
  func.func @transform_0(%arg0: i32) -> (i32, i32) {
    %c0_i32 = arith.constant 0 : i32
    %c0_i32_0 = arith.constant 0 : i32
    return %arg0, %c0_i32 : i32, i32
  }
  func.func @transform_1(%arg0: i32) -> (i32, i32) {
    %c0_i32 = arith.constant 0 : i32
    %c0_i32_0 = arith.constant 0 : i32
    %c0_i32_1 = arith.constant 0 : i32
    return %c0_i32, %c0_i32_0 : i32, i32
  }
  func.func @transform_2(%arg0: i32) -> (i32, i32) {
    %c0_i32 = arith.constant 0 : i32
    %c0_i32_0 = arith.constant 0 : i32
    return %arg0, %c0_i32 : i32, i32
  }
}

</mosaic_0001>

<bundles_post_ra>
// kernel: tpu_custom_call.1
= control target key start
LH: loop header
LB: loop body
LE: loop exit
PB: predicated region body
PF: predicated region fallthrough
CT: control target
= control target key end

     0   :  { %7 = vsyncpa [#allocation3], 0  ;;  %s133_s0 = inlined_call_operand.hbm [shape: f32[4,128], index: 0, kind: input, shape index: {}]   ;;  %s134_s1 = inlined_call_operand.vmem [shape: f32[1,128], index: 1, kind: input, shape index: {}]   ;;  %s135_s2 = inlined_call_operand.hbm [shape: f32[4,128], index: 2, kind: output, shape index: {}]  }
   0x1   :  { %8 = vsyncpa [#allocation4], 0  ;;  %s107_s9 = smov [#allocation2]  }
   0x2   :  { %s15_s10 = sshll.u32 %s107_s9, 4  ;;  %s16_s10 = int_to_ptr.vmem [resolvable:$true] %s15_s10 }
   0x3   :  { %s71_s11 = scalar_lea.vmem %s16_s10, 64  ;;  %p76_p1 = scmp.lt.s32.totalorder %s16_s10, %s16_s10 }
   0x4   :  { %p72_p0 = scmp.ne.s32.totalorder %s16_s10, %s71_s11  ;;  %p77_p2 = scmp.lt.s32.totalorder %s71_s11, %s71_s11 }
   0x6   :  { %p78_p3 = por %p77_p2, %p76_p1 }
   0x8   :  { %p79_p4 = pnand %p78_p3, %p72_p0 }
   0xa   :  { %82 = shalt.err (!%p79_p4)
}
   0xb   :  { %18 = dma.hbm_to_vmem [thread:$0]  %s133_s0, 64, %s16_s10, [#allocation3]  }
   0xc   :  { %103 = dma.done.wait [#allocation3], 64  }
   0xd   :  { %104 = vsyncadd [#allocation3], 4294967232  ;;  %v24_v0 = vld [vmem:[#allocation2] sm:$0xf]  ;;  %s108_s16 = smov [#allocation5]  }
   0xe   :  { %v55_v1 = vld [vmem:[%s134_s1] ss:$0 sm:$0xff]  ;;  %s46_s17 = sshll.u32 %s108_s16, 4  ;;  %s47_s17 = int_to_ptr.vmem [resolvable:$true] %s46_s17 }
   0xf   :  { %v32_v2 = vmul.f32 %v55_v1, %v24_v0  ;;  %s83_s18 = scalar_lea.vmem %s47_s17, 64  ;;  %p88_p6 = scmp.lt.s32.totalorder %s47_s17, %s47_s17 }
  0x10   :  { %p84_p5 = scmp.ne.s32.totalorder %s47_s17, %s83_s18  ;;  %p89_p7 = scmp.lt.s32.totalorder %s83_s18, %s83_s18 }
  0x11   :  { %v56_v3 = vmul.f32 -1.442695, %v32_v2 }
  0x12   :  { %p90_p8 = por %p89_p7, %p88_p6 }
  0x13   :  { %59 = vpow2.f32 %v56_v3 }
  0x14   :  { %p91_p9 = pnand %p90_p8, %p84_p5 }
  0x20   :  { %v60_v4 = vpop.eup %59 }
  0x21   :  { %v36_v5 = vadd.f32 1.0, %v60_v4 }
  0x23   :  { %61 = vrcp.f32 %v36_v5 }
  0x30   :  { %v62_v6 = vpop.eup %61 }
  0x31   :  { %39 = vst [vmem:[#allocation5] sm:$0xf] %v62_v6 }
  0x32   :  { %94 = shalt.err (!%p91_p9)
}
  0x33   :  { %49 = dma.vmem_to_hbm [thread:$0]  %s47_s17, 64, %s135_s2, [#allocation4]  }
  0x34   :  { %105 = dma.done.wait [#allocation4], 64  }
  0x35   :  { %106 = vsyncadd [#allocation4], 4294967232 }
  0x36   :  { %53 = vsyncpa [#allocation3], 1 }
  0x37   :  { %54 = vsyncpa [#allocation4], 1 }

</bundles_post_ra>
